<compile_context>
chip_gen: v5e
topology: v5e:2x2
jax: 0.10.0
libtpu: 0.0.40
codegen_flags: <defaults>
</compile_context>

<pallas_src>
import math
import functools

import jax
import jax.numpy as jnp
from jax import lax
from jax.experimental import pallas as pl
from jax.experimental.pallas import tpu as pltpu


def _round_up(x, m):
    return ((x + m - 1) // m) * m


# ---------------------------------------------------------------------------
# Kernels
# ---------------------------------------------------------------------------
def _logreg_single_k_kernel(seq_ref, w_ref, b_ref, out_ref):
    # Single K step: no scratch accumulator, bias fused into the epilogue of
    # the one dot. seq_ref: (tm, F), w_ref: (C, F) PyTorch layout, b_ref: (1, C).
    acc = lax.dot_general(
        seq_ref[...], w_ref[...],
        dimension_numbers=(((1,), (1,)), ((), ())),   # contract on ft_in
        preferred_element_type=jnp.float32,
    )
    out_ref[...] = (acc + b_ref[...]).astype(out_ref.dtype)


def _logreg_tiled_kernel(seq_ref, w_ref, b_ref, out_ref, acc_ref):
    # General (i, j, k) tiled path with resident f32 VMEM accumulator (P1+P3).
    k = pl.program_id(2)

    @pl.when(k == 0)
    def _():
        acc_ref[...] = jnp.zeros_like(acc_ref)

    acc_ref[...] += lax.dot_general(
        seq_ref[...], w_ref[...],
        dimension_numbers=(((1,), (1,)), ((), ())),
        preferred_element_type=jnp.float32,
    )

    @pl.when(k == pl.num_programs(2) - 1)
    def _():
        out_ref[...] = (acc_ref[...] + b_ref[...]).astype(out_ref.dtype)


# ---------------------------------------------------------------------------
# Wrapper
# ---------------------------------------------------------------------------
@functools.partial(jax.jit, static_argnames=("use_bf16", "force_tiled"))
def logreg_forward(seq, weight, bias, *, use_bf16=False, force_tiled=False):
    """seq: (B, ft_in); weight: (nb_classes, ft_in) [PyTorch layout]; bias: (nb_classes,)."""
    B, F = seq.shape
    C = weight.shape[0]
    out_dtype = seq.dtype

    op_dtype = jnp.bfloat16 if use_bf16 else seq.dtype
    op_bytes = jnp.dtype(op_dtype).itemsize
    out_bytes = jnp.dtype(out_dtype).itemsize
    sub = 16 if use_bf16 else 8            # sublane packing of operand dtype

    if use_bf16:
        # bf16 operands, f32 accumulation: halves seq+weight HBM traffic and
        # hits the native bf16 MXU path. Off by default for exact f32 parity.
        seq = seq.astype(jnp.bfloat16)
        weight = weight.astype(jnp.bfloat16)
    bias2d = bias.reshape(1, C).astype(jnp.float32)

    weight_bytes = C * F * op_bytes
    seq_row_bytes = F * op_bytes

    # ---------------- Path A: weight-resident, single-K fast path ----------
    # Weight + bias live in VMEM for the whole kernel (fetched once), seq is
    # streamed in batch tiles. No scratch, no K loop, and in the common case
    # no padding and no output slice (full-dim blocks bypass (8,128) rule).
    small = (not force_tiled
             and weight_bytes <= 8 * 1024 * 1024
             and sub * seq_row_bytes <= 6 * 1024 * 1024)

    if small:
        # Largest batch tile keeping double-buffered seq blocks under ~12 MiB:
        # safe under v7x's 64 MiB VMEM, plenty of headroom on v5e/v6e (128 MiB).
        tm_cap = max(sub, ((6 * 1024 * 1024) // seq_row_bytes) // sub * sub)
        tm_cap = min(tm_cap, 1024)
        if B <= tm_cap:
            tm, B_pad = B, B               # full-dim block → no pad, no slice
        else:
            tm = tm_cap
            B_pad = _round_up(B, tm)

        seq_p = seq if B_pad == B else jnp.pad(seq, ((0, B_pad - B), (0, 0)))

        cost = pl.CostEstimate(
            flops=2 * B_pad * F * C,
            transcendentals=0,
            bytes_accessed=(B_pad * F * op_bytes      # seq streamed once
                            + C * F * op_bytes        # weight fetched once
                            + 4 * C                   # bias (f32)
                            + B_pad * C * out_bytes), # output
        )

        out_p = pl.pallas_call(
            _logreg_single_k_kernel,
            out_shape=jax.ShapeDtypeStruct((B_pad, C), out_dtype),
            grid=(B_pad // tm,),
            in_specs=[
                pl.BlockSpec((tm, F), lambda i: (i, 0)),   # streamed seq tile
                pl.BlockSpec((C, F), lambda i: (0, 0)),    # resident weight
                pl.BlockSpec((1, C), lambda i: (0, 0)),    # resident bias
            ],
            out_specs=pl.BlockSpec((tm, C), lambda i: (i, 0)),
            compiler_params=pltpu.CompilerParams(
                dimension_semantics=("parallel",),         # megacore over batch
                vmem_limit_bytes=48 * 1024 * 1024,
            ),
            cost_estimate=cost,
        )(seq_p, weight, bias2d)

        return out_p if B_pad == B else out_p[:B]

    # ---------------- Path B: general tiled (i, j, k) path -----------------
    tm = min(_round_up(B, sub), 512)
    tn = min(_round_up(C, 128), 256)
    tk = min(_round_up(F, 128), 1024)

    B_pad = _round_up(B, tm)
    C_pad = _round_up(C, tn)
    F_pad = _round_up(F, tk)

    # Pad only when required (zero features contribute 0; padded classes get
    # zero weight/bias and are sliced off below).
    seq_p = (seq if (B_pad == B and F_pad == F)
             else jnp.pad(seq, ((0, B_pad - B), (0, F_pad - F))))
    w_p = (weight if (C_pad == C and F_pad == F)
           else jnp.pad(weight, ((0, C_pad - C), (0, F_pad - F))))
    b_p = bias2d if C_pad == C else jnp.pad(bias2d, ((0, 0), (0, C_pad - C)))

    gi, gj, gk = B_pad // tm, C_pad // tn, F_pad // tk

    cost = pl.CostEstimate(
        flops=2 * B_pad * F_pad * C_pad,
        transcendentals=0,
        bytes_accessed=(B_pad * F_pad * op_bytes
                        + gi * C_pad * F_pad * op_bytes   # weight re-read per i
                        + 4 * C_pad
                        + B_pad * C_pad * out_bytes),
    )

    params_2d = pltpu.CompilerParams(
        dimension_semantics=("parallel", "parallel"),
        vmem_limit_bytes=48 * 1024 * 1024,
    )
    params_3d = pltpu.CompilerParams(
        dimension_semantics=("parallel", "parallel", "arbitrary"),
        vmem_limit_bytes=48 * 1024 * 1024,
    )

    if gk == 1:
        # Single K step: drop the scratch accumulator and predicated epilogue.
        out_p = pl.pallas_call(
            _logreg_single_k_kernel,
            out_shape=jax.ShapeDtypeStruct((B_pad, C_pad), out_dtype),
            grid=(gi, gj),
            in_specs=[
                pl.BlockSpec((tm, tk), lambda i, j: (i, 0)),
                pl.BlockSpec((tn, tk), lambda i, j: (j, 0)),
                pl.BlockSpec((1, tn), lambda i, j: (0, j)),
            ],
            out_specs=pl.BlockSpec((tm, tn), lambda i, j: (i, j)),
            compiler_params=params_2d,
            cost_estimate=cost,
        )(seq_p, w_p, b_p)
    else:
        # Working set at tm=512/tn=256/tk=1024 f32: ~7.5 MiB double-buffered.
        out_p = pl.pallas_call(
            _logreg_tiled_kernel,
            out_shape=jax.ShapeDtypeStruct((B_pad, C_pad), out_dtype),
            grid=(gi, gj, gk),
            in_specs=[
                pl.BlockSpec((tm, tk), lambda i, j, k: (i, k)),
                pl.BlockSpec((tn, tk), lambda i, j, k: (j, k)),
                pl.BlockSpec((1, tn), lambda i, j, k: (0, j)),
            ],
            out_specs=pl.BlockSpec((tm, tn), lambda i, j, k: (i, j)),
            scratch_shapes=[pltpu.VMEM((tm, tn), jnp.float32)],
            compiler_params=params_3d,
            cost_estimate=cost,
        )(seq_p, w_p, b_p)

    return out_p[:B, :C]


def xavier_uniform(key, shape, dtype=jnp.float32):
    # Matches torch.nn.init.xavier_uniform_ for a (fan_out, fan_in) Linear weight.
    fan_out, fan_in = shape
    limit = math.sqrt(6.0 / (fan_in + fan_out))
    return jax.random.uniform(key, shape, dtype, minval=-limit, maxval=limit)


if __name__ == "__main__":
    ft_in, nb_classes = 32, 16
    batch = 8

    key = jax.random.PRNGKey(0)
    k_w, k_x = jax.random.split(key)

    # Deterministic parameter init per module __init__: Xavier-uniform weight, zero bias.
    weight = xavier_uniform(k_w, (nb_classes, ft_in))
    bias = jnp.zeros((nb_classes,), dtype=jnp.float32)
    seq = jax.random.normal(k_x, (batch, ft_in), dtype=jnp.float32)

    ref = seq @ weight.T + bias

    # Fast path: weight-resident, single K step, no padding, no output slice.
    out = logreg_forward(seq, weight, bias)
    jax.block_until_ready(out)
    assert out.shape == (batch, nb_classes)
    assert jnp.allclose(out, ref, atol=1e-5, rtol=1e-5)

    # General tiled path (exercised at small shape via force_tiled).
    out_tiled = logreg_forward(seq, weight, bias, force_tiled=True)
    jax.block_until_ready(out_tiled)
    assert jnp.allclose(out_tiled, ref, atol=1e-5, rtol=1e-5)

    # bf16 operand path (f32 accumulate) — looser tolerance.
    out_bf16 = logreg_forward(seq, weight, bias, use_bf16=True)
    jax.block_until_ready(out_bf16)
    assert jnp.allclose(out_bf16, ref, atol=2e-2, rtol=2e-2)

    print("KERNEL_OK")
</pallas_src>

<mosaic_0001>
module attributes {stable_mosaic.version = 11 : i64} {
  func.func @_logreg_single_k_kernel(%arg0: i32, %arg1: memref<8x32xf32, #tpu.memory_space<vmem>>, %arg2: memref<16x32xf32, #tpu.memory_space<vmem>>, %arg3: memref<1x16xf32, #tpu.memory_space<vmem>>, %arg4: memref<8x16xf32, #tpu.memory_space<vmem>>) attributes {dimension_semantics = [#tpu.dimension_semantics<parallel>], iteration_bounds = array<i64: 1>, scalar_prefetch = 0 : i64, scratch_operands = 0 : i64, tpu.core_type = #tpu.core_type<tc>, window_params = [{transform_indices = @transform_0, window_bounds = array<i64: 8, 32>}, {pipeline_mode = #tpu.pipeline_mode<synchronous>, transform_indices = @transform_1, window_bounds = array<i64: 16, 32>}, {pipeline_mode = #tpu.pipeline_mode<synchronous>, transform_indices = @transform_2, window_bounds = array<i64: 1, 16>}, {transform_indices = @transform_3, window_bounds = array<i64: 8, 16>}]} {
    %c0 = arith.constant 0 : index
    %c0_0 = arith.constant 0 : index
    %0 = vector.load %arg1[%c0, %c0_0] : memref<8x32xf32, #tpu.memory_space<vmem>>, vector<8x32xf32>
    %c0_1 = arith.constant 0 : index
    %c0_2 = arith.constant 0 : index
    %1 = vector.load %arg2[%c0_1, %c0_2] : memref<16x32xf32, #tpu.memory_space<vmem>>, vector<16x32xf32>
    %cst = arith.constant dense<0.000000e+00> : vector<8x16xf32>
    %2 = tpu.matmul %0, %1, %cst {dimension_numbers = #tpu.dot_dimension_numbers<[1], [1], [0], [0], [0, 0, 1, 0], [], []>} : vector<8x32xf32>, vector<16x32xf32>, vector<8x16xf32> -> vector<8x16xf32>
    %c0_3 = arith.constant 0 : index
    %c0_4 = arith.constant 0 : index
    %3 = vector.load %arg3[%c0_3, %c0_4] : memref<1x16xf32, #tpu.memory_space<vmem>>, vector<1x16xf32>
    %4 = vector.broadcast %3 : vector<1x16xf32> to vector<8x16xf32>
    %5 = arith.addf %2, %4 : vector<8x16xf32>
    %c0_5 = arith.constant 0 : index
    %c0_6 = arith.constant 0 : index
    %6 = vector.load %arg4[%c0_5, %c0_6] : memref<8x16xf32, #tpu.memory_space<vmem>>, vector<8x16xf32>
    tpu.vector_store %arg4[%c0_5, %c0_6], %5 {strides = array<i32>} : memref<8x16xf32, #tpu.memory_space<vmem>>, vector<8x16xf32>,
    return
  }
  func.func @transform_0(%arg0: i32) -> (i32, i32) {
    %c0_i32 = arith.constant 0 : i32
    %c0_i32_0 = arith.constant 0 : i32
    return %arg0, %c0_i32 : i32, i32
  }
  func.func @transform_1(%arg0: i32) -> (i32, i32) {
    %c0_i32 = arith.constant 0 : i32
    %c0_i32_0 = arith.constant 0 : i32
    %c0_i32_1 = arith.constant 0 : i32
    return %c0_i32, %c0_i32_0 : i32, i32
  }
  func.func @transform_2(%arg0: i32) -> (i32, i32) {
    %c0_i32 = arith.constant 0 : i32
    %c0_i32_0 = arith.constant 0 : i32
    %c0_i32_1 = arith.constant 0 : i32
    return %c0_i32, %c0_i32_0 : i32, i32
  }
  func.func @transform_3(%arg0: i32) -> (i32, i32) {
    %c0_i32 = arith.constant 0 : i32
    %c0_i32_0 = arith.constant 0 : i32
    return %arg0, %c0_i32 : i32, i32
  }
}

</mosaic_0001>

<bundles_post_ra>
// kernel: logreg_forward.1
= control target key start
LH: loop header
LB: loop body
LE: loop exit
PB: predicated region body
PF: predicated region fallthrough
CT: control target
= control target key end

     0   :  { %8 = vsyncpa [#allocation3], 0  ;;  %s226_s0 = inlined_call_operand.hbm [shape: f32[8,32], index: 0, kind: input, shape index: {}]   ;;  %s227_s1 = inlined_call_operand.hbm [shape: f32[16,32], index: 1, kind: input, shape index: {}]   ;;  %s228_s2 = inlined_call_operand.vmem [shape: f32[1,16], index: 2, kind: input, shape index: {}]   ;;  %s229_s3 = inlined_call_operand.hbm [shape: f32[8,16], index: 3, kind: output, shape index: {}]  }
   0x1   :  { %9 = vsyncpa [#allocation6], 0 }
   0x2   :  { %10 = vsyncpa [#allocation4], 0  ;;  %s16_s14 = sshll.u32 %s226_s0, 4  ;;  %s189_s15 = smov [#allocation2]   ;;  %s17_s14 = int_to_ptr.hbm [resolvable:$true] %s16_s14 }
   0x3   :  { %s18_s16 = sshll.u32 %s189_s15, 4  ;;  %s26_s19 = sshll.u32 %s227_s1, 4  ;;  %s19_s16 = int_to_ptr.vmem [resolvable:$true] %s18_s16  ;;  %s27_s19 = int_to_ptr.hbm [resolvable:$true] %s26_s19 }
   0x4   :  { %21 = dma.hbm_to_vmem [thread:$0]  %s17_s14, 128, %s19_s16, [#allocation3]  }
   0x5   :  { %s190_s20 = smov [#allocation5]   ;;  %s191_s22 = smov 128  }
   0x6   :  { %s28_s21 = sshll.u32 %s190_s20, 4  ;;  %s192_s23 = smov 8   ;;  %s29_s21 = int_to_ptr.vmem [resolvable:$true] %s28_s21 }
   0x7   :  { %34 = dma.hbm_to_vmem [thread:$0]  %s27_s19, 256, %s29_s21, [#allocation6], %s191_s22, %s191_s22, %s192_s23  }
   0x8   :  { %183 = dma.done.wait [#allocation3], 128  }
   0x9   :  { %184 = vsyncadd [#allocation3], 4294967168 }
   0xa   :  { %185 = dma.done.wait [#allocation6], 256  }
   0xb   :  { %186 = vsyncadd [#allocation6], 4294967040  ;;  %vm52_vm0 = vcmask 261120   ;;  %v47_v0 = vld [vmem:[#allocation5 + $0x8] sm:$0xff]  ;;  %v46_v1 = vld [vmem:[#allocation5] sm:$0xff]  ;;  %s193_s24 = smov [#allocation7]  }
   0xc   :  { %102 = vmatpush.xpose.msk.msra.mxu0 %vm52_vm0, %v47_v0  ;;  %v45_v2 = vld [vmem:[#allocation2] sm:$0xff]  ;;  %s89_s25 = sshll.u32 %s193_s24, 4  ;;  %s91_s28 = sshll.u32 %s229_s3, 4  ;;  %vm82_vm1 = vcmask 130048   ;;  %s90_s25 = int_to_ptr.vmem [resolvable:$true] %s89_s25  ;;  %s92_s28 = int_to_ptr.hbm [resolvable:$true] %s91_s28 }
   0xd   :  { %v110_v3 = vld [vmem:[%s228_s2] ss:$0 sm:$0xff] }
  0x10   :  { %103 = vmatpush.xpose.msk.msra.mxu0 %vm52_vm0, %v46_v1 }
  0x13   :  { %104 = vmatmul.msk.f32.vlgmr.msra.gmra.mxu0 %vm52_vm0, %v45_v2 }
  0x90   :  { %v79_v4 = vpop.f32.mrf.mxu0 }
  0x91   :  { %v80_v5 = vadd.f32 %v110_v3, %v79_v4 }
  0x93   :  { %83 = vst.msk [vmem:[#allocation7] sm:$0xff] %vm82_vm1, %v80_v5 }
  0x94   :  { %94 = dma.vmem_to_hbm [thread:$0]  %s90_s25, 128, %s92_s28, [#allocation4]  }
  0x95   :  { %187 = dma.done.wait [#allocation4], 128  }
  0x96   :  { %188 = vsyncadd [#allocation4], 4294967168 }
  0x97   :  { %99 = vsyncpa [#allocation3], 1 }
  0x98   :  { %100 = vsyncpa [#allocation6], 1 }
  0x99   :  { %101 = vsyncpa [#allocation4], 1 }

</bundles_post_ra>
